<compile_context>
chip_gen: v7x
topology: tpu7x:2x2x1
jax: 0.10.0
libtpu: 0.0.40
codegen_flags: <defaults>
</compile_context>

<pallas_src>
import jax
import jax.numpy as jnp
import numpy as np
from jax import lax
from jax.experimental import pallas as pl
from jax.experimental.pallas import tpu as pltpu


def lstm_critic_kernel(x3_ref, wih_ref, b_ref, whh_ref, wfc_ref, bfc_ref, out_ref):
    # x3_ref : (B, N, 1)  f32  -- cat([s, a], 1)[..., None]  (B = time, N = lstm batch)
    # wih_ref: (1, 1, 4H) f32  -- w_ih row vector, g-gate columns pre-scaled by 2
    # b_ref  : (1, 1, 4H) f32  -- b_ih + b_hh, g-gate columns pre-scaled by 2
    # whh_ref: (H, 4H)    bf16 -- W_hh^T (MXU operand), g-gate columns pre-scaled by 2
    # wfc_ref: (N, A, H)  bf16 -- fc1.weight reshaped (A, N, H) -> (N, A, H), lane-dense on H
    # bfc_ref: (1, A)     f32  -- fc1.bias
    # out_ref: (B, A)     f32
    B, N, _ = x3_ref.shape
    H = whh_ref.shape[0]
    A = wfc_ref.shape[1]

    whh = whh_ref[...]                                        # (H, 4H) bf16, loaded once

    # Prologue, off the recurrence chain: xw[b, n, :] = x[b, n] * w_ih + (b_ih + b_hh).
    xw = x3_ref[...] * wih_ref[...] + b_ref[...]              # (B, N, 4H) f32, ~4 vregs

    h = jnp.zeros((N, H), jnp.float32)
    c = jnp.zeros((N, H), jnp.float32)
    hs = []

    # Serial recurrence over the outer batch dim B (== nn.LSTM's time axis).
    for t in range(B):
        gates = xw[t] + jnp.dot(h.astype(jnp.bfloat16), whh,
                                preferred_element_type=jnp.float32)   # (N, 4H) f32
        # Single full-vreg EUP pass (sigmoid); g-gate recovered via tanh(x)=2*sigmoid(2x)-1
        # (its pre-activation was pre-scaled by 2 in the weights/bias).
        sig = jax.nn.sigmoid(gates)
        i_g = sig[:, 0:H]
        f_g = sig[:, H:2 * H]
        g_g = 2.0 * sig[:, 2 * H:3 * H] - 1.0
        o_g = sig[:, 3 * H:4 * H]
        c = f_g * c + i_g * g_g
        h = o_g * jnp.tanh(c)                                 # only remaining (N, H) tanh
        hs.append(h)                                          # stays in vregs, no VMEM store

    # All B hidden states in registers; stack along the leading dim (no relayout).
    hs_stack = jnp.stack(hs, axis=0)                          # (B, N, H) f32

    # fc1: out[b, a] = sum_n hs[b, n, :] . wfc[n, a, :] + bias  -- N clean 2-D MXU dots,
    # entirely off the recurrence chain, one lane-dense output store at the end.
    acc = jnp.zeros((B, A), jnp.float32)
    for n in range(N):
        h_n = hs_stack[:, n, :].astype(jnp.bfloat16)          # (B, H)
        acc = acc + lax.dot_general(h_n, wfc_ref[n],          # (B, H) x (A, H) -> (B, A)
                                    (((1,), (1,)), ((), ())),
                                    preferred_element_type=jnp.float32)
    out_ref[...] = acc + bfc_ref[...]


def lstm_critic_forward(s, a, kp):
    # Only two trivial HLO ops outside the kernel: the concat and the unsqueeze
    # (matching torch.cat + torch.unsqueeze); all heavy precompute lives in the kernel
    # prologue, and all dtype casts / weight reshapes were done once in prepare_kernel_params.
    x3 = jnp.concatenate([s, a], axis=1).astype(jnp.float32)[:, :, None]  # (B, N, 1)
    B = x3.shape[0]
    A = kp["bfc"].shape[-1]

    vmem = pl.BlockSpec(memory_space=pltpu.MemorySpace.VMEM)
    return pl.pallas_call(
        lstm_critic_kernel,
        out_shape=jax.ShapeDtypeStruct((B, A), jnp.float32),
        in_specs=[vmem] * 6,
        out_specs=vmem,
    )(x3, kp["wih"], kp["b"], kp["whh_t"], kp["wfc_nah"], kp["bfc"])


def init_raw_params(key, state_dim, hidden, action_dim):
    """Deterministic synthetic parameters with the same shapes/layouts as the nn.Module."""
    N = state_dim + action_dim
    H = hidden
    ks = jax.random.split(key, 6)
    return dict(
        w_ih=0.1 * jax.random.normal(ks[0], (4 * H, 1), jnp.float32),            # lstm.weight_ih_l0
        w_hh=0.1 * jax.random.normal(ks[1], (4 * H, H), jnp.float32),            # lstm.weight_hh_l0
        b_ih=0.1 * jax.random.normal(ks[2], (4 * H,), jnp.float32),              # lstm.bias_ih_l0
        b_hh=0.1 * jax.random.normal(ks[3], (4 * H,), jnp.float32),              # lstm.bias_hh_l0
        w_fc=0.1 * jax.random.normal(ks[4], (action_dim, H * N), jnp.float32),   # fc1.weight
        b_fc=0.1 * jax.random.normal(ks[5], (action_dim,), jnp.float32),         # fc1.bias
    )


def prepare_kernel_params(raw, state_dim, hidden, action_dim):
    """One-time transform to the kernel layout: combined bias, g-gate pre-scale (tanh-as-
    sigmoid trick), bf16 casts of the MXU weight operands, (N, A, H) fc weight reshape."""
    N = state_dim + action_dim
    H = hidden
    A = action_dim
    # tanh(x) = 2*sigmoid(2x) - 1  -> scale the g-gate columns (2H:3H) by 2 so the kernel
    # only issues one full-vreg sigmoid per step.  (x2 is exact, also after the bf16 cast.)
    g_scale = jnp.ones((4 * H,), jnp.float32).at[2 * H:3 * H].set(2.0)
    return dict(
        wih=(raw["w_ih"][:, 0] * g_scale).reshape(1, 1, 4 * H),                  # (1,1,4H) f32
        b=((raw["b_ih"] + raw["b_hh"]) * g_scale).reshape(1, 1, 4 * H),          # (1,1,4H) f32
        whh_t=(raw["w_hh"].T * g_scale[None, :]).astype(jnp.bfloat16),           # (H,4H) bf16
        wfc_nah=raw["w_fc"].reshape(A, N, H).transpose(1, 0, 2)
                            .astype(jnp.bfloat16),                               # (N,A,H) bf16
        bfc=raw["b_fc"].reshape(1, A),                                           # (1,A) f32
    )


def reference_forward(s, a, raw):
    """Pure-JAX f32 reference mirroring the PyTorch forward (raw PyTorch-layout params)."""
    x = jnp.concatenate([s, a], axis=1)                      # (B, N)
    B, N = x.shape
    H = raw["w_hh"].shape[1]
    w_ih = raw["w_ih"][:, 0]
    bias = raw["b_ih"] + raw["b_hh"]
    h = jnp.zeros((N, H), jnp.float32)
    c = jnp.zeros((N, H), jnp.float32)
    outs = []
    for t in range(B):
        gates = x[t][:, None] * w_ih[None, :] + h @ raw["w_hh"].T + bias[None, :]
        i_g = jax.nn.sigmoid(gates[:, 0:H])
        f_g = jax.nn.sigmoid(gates[:, H:2 * H])
        g_g = jnp.tanh(gates[:, 2 * H:3 * H])
        o_g = jax.nn.sigmoid(gates[:, 3 * H:4 * H])
        c = f_g * c + i_g * g_g
        h = o_g * jnp.tanh(c)
        outs.append(h.reshape(-1) @ raw["w_fc"].T + raw["b_fc"])
    return jnp.stack(outs)


if __name__ == "__main__":
    state_dim, hidden_layer_size, action_dim = 6, 32, 2
    batch = 4

    key = jax.random.PRNGKey(0)
    k_s, k_a, k_p = jax.random.split(key, 3)
    s = jax.random.normal(k_s, (batch, state_dim), jnp.float32)
    a = jax.random.normal(k_a, (batch, action_dim), jnp.float32)

    raw = init_raw_params(k_p, state_dim, hidden_layer_size, action_dim)
    kp = prepare_kernel_params(raw, state_dim, hidden_layer_size, action_dim)

    fwd = jax.jit(lstm_critic_forward)
    out = jax.block_until_ready(fwd(s, a, kp))
    ref = reference_forward(s, a, raw)

    assert out.shape == (batch, action_dim)
    # Tolerance accounts for bf16 MXU operands (f32 accumulation, f32 recurrent state/activations).
    np.testing.assert_allclose(np.asarray(out), np.asarray(ref), atol=2e-2, rtol=2e-2)
    print("KERNEL_OK")
</pallas_src>

<mosaic_0001>
module attributes {stable_mosaic.version = 11 : i64} {
  func.func @lstm_critic_kernel(%arg0: memref<4x8x1xf32, #tpu.memory_space<vmem>>, %arg1: memref<1x1x128xf32, #tpu.memory_space<vmem>>, %arg2: memref<1x1x128xf32, #tpu.memory_space<vmem>>, %arg3: memref<32x128xbf16, #tpu.memory_space<vmem>>, %arg4: memref<8x2x32xbf16, #tpu.memory_space<vmem>>, %arg5: memref<1x2xf32, #tpu.memory_space<vmem>>, %arg6: memref<4x2xf32, #tpu.memory_space<vmem>>) attributes {dimension_semantics = [], scalar_prefetch = 0 : i64, scratch_operands = 0 : i64, tpu.core_type = #tpu.core_type<tc>} {
    %c0 = arith.constant 0 : index
    %c0_0 = arith.constant 0 : index
    %0 = vector.load %arg3[%c0, %c0_0] : memref<32x128xbf16, #tpu.memory_space<vmem>>, vector<32x128xbf16>
    %c0_1 = arith.constant 0 : index
    %c0_2 = arith.constant 0 : index
    %c0_3 = arith.constant 0 : index
    %1 = vector.load %arg0[%c0_1, %c0_2, %c0_3] : memref<4x8x1xf32, #tpu.memory_space<vmem>>, vector<4x8x1xf32>
    %c0_4 = arith.constant 0 : index
    %c0_5 = arith.constant 0 : index
    %c0_6 = arith.constant 0 : index
    %2 = vector.load %arg1[%c0_4, %c0_5, %c0_6] : memref<1x1x128xf32, #tpu.memory_space<vmem>>, vector<1x1x128xf32>
    %3 = vector.broadcast %1 : vector<4x8x1xf32> to vector<4x8x128xf32>
    %4 = vector.broadcast %2 : vector<1x1x128xf32> to vector<4x8x128xf32>
    %5 = arith.mulf %3, %4 : vector<4x8x128xf32>
    %c0_7 = arith.constant 0 : index
    %c0_8 = arith.constant 0 : index
    %c0_9 = arith.constant 0 : index
    %6 = vector.load %arg2[%c0_7, %c0_8, %c0_9] : memref<1x1x128xf32, #tpu.memory_space<vmem>>, vector<1x1x128xf32>
    %7 = vector.broadcast %6 : vector<1x1x128xf32> to vector<4x8x128xf32>
    %8 = arith.addf %5, %7 : vector<4x8x128xf32>
    %cst = arith.constant 0.000000e+00 : f32
    %9 = vector.broadcast %cst : f32 to vector<8x32xf32>
    %cst_10 = arith.constant 0.000000e+00 : f32
    %10 = vector.broadcast %cst_10 : f32 to vector<8x32xf32>
    %11 = vector.extract_strided_slice %8 {offsets = [0, 0, 0], sizes = [1, 8, 128], strides = [1, 1, 1]} : vector<4x8x128xf32> to vector<1x8x128xf32>
    %12 = vector.shape_cast %11 : vector<1x8x128xf32> to vector<8x128xf32>
    %13 = arith.truncf %9 : vector<8x32xf32> to vector<8x32xbf16>
    %cst_11 = arith.constant dense<0.000000e+00> : vector<8x128xf32>
    %14 = tpu.matmul %13, %0, %cst_11 {dimension_numbers = #tpu.dot_dimension_numbers<[1], [0], [0], [1], [0, 0, 1, 1], [], []>} : vector<8x32xbf16>, vector<32x128xbf16>, vector<8x128xf32> -> vector<8x128xf32>
    %15 = arith.addf %12, %14 : vector<8x128xf32>
    %16 = arith.negf %15 : vector<8x128xf32>
    %17 = math.exp %16 : vector<8x128xf32>
    %cst_12 = arith.constant 1.000000e+00 : f32
    %18 = vector.broadcast %cst_12 : f32 to vector<8x128xf32>
    %19 = arith.addf %18, %17 : vector<8x128xf32>
    %20 = arith.divf %18, %19 : vector<8x128xf32>
    %21 = vector.extract_strided_slice %20 {offsets = [0, 0], sizes = [8, 32], strides = [1, 1]} : vector<8x128xf32> to vector<8x32xf32>
    %22 = vector.extract_strided_slice %20 {offsets = [0, 32], sizes = [8, 32], strides = [1, 1]} : vector<8x128xf32> to vector<8x32xf32>
    %23 = vector.extract_strided_slice %20 {offsets = [0, 64], sizes = [8, 32], strides = [1, 1]} : vector<8x128xf32> to vector<8x32xf32>
    %cst_13 = arith.constant 2.000000e+00 : f32
    %24 = vector.broadcast %cst_13 : f32 to vector<8x32xf32>
    %25 = arith.mulf %24, %23 : vector<8x32xf32>
    %cst_14 = arith.constant 1.000000e+00 : f32
    %26 = vector.broadcast %cst_14 : f32 to vector<8x32xf32>
    %27 = arith.subf %25, %26 : vector<8x32xf32>
    %28 = vector.extract_strided_slice %20 {offsets = [0, 96], sizes = [8, 32], strides = [1, 1]} : vector<8x128xf32> to vector<8x32xf32>
    %29 = arith.mulf %22, %10 : vector<8x32xf32>
    %30 = arith.mulf %21, %27 : vector<8x32xf32>
    %31 = arith.addf %29, %30 : vector<8x32xf32>
    %32 = math.tanh %31 : vector<8x32xf32>
    %33 = arith.mulf %28, %32 : vector<8x32xf32>
    %34 = vector.extract_strided_slice %8 {offsets = [1, 0, 0], sizes = [1, 8, 128], strides = [1, 1, 1]} : vector<4x8x128xf32> to vector<1x8x128xf32>
    %35 = vector.shape_cast %34 : vector<1x8x128xf32> to vector<8x128xf32>
    %36 = arith.truncf %33 : vector<8x32xf32> to vector<8x32xbf16>
    %cst_15 = arith.constant dense<0.000000e+00> : vector<8x128xf32>
    %37 = tpu.matmul %36, %0, %cst_15 {dimension_numbers = #tpu.dot_dimension_numbers<[1], [0], [0], [1], [0, 0, 1, 1], [], []>} : vector<8x32xbf16>, vector<32x128xbf16>, vector<8x128xf32> -> vector<8x128xf32>
    %38 = arith.addf %35, %37 : vector<8x128xf32>
    %39 = arith.negf %38 : vector<8x128xf32>
    %40 = math.exp %39 : vector<8x128xf32>
    %cst_16 = arith.constant 1.000000e+00 : f32
    %41 = vector.broadcast %cst_16 : f32 to vector<8x128xf32>
    %42 = arith.addf %41, %40 : vector<8x128xf32>
    %43 = arith.divf %41, %42 : vector<8x128xf32>
    %44 = vector.extract_strided_slice %43 {offsets = [0, 0], sizes = [8, 32], strides = [1, 1]} : vector<8x128xf32> to vector<8x32xf32>
    %45 = vector.extract_strided_slice %43 {offsets = [0, 32], sizes = [8, 32], strides = [1, 1]} : vector<8x128xf32> to vector<8x32xf32>
    %46 = vector.extract_strided_slice %43 {offsets = [0, 64], sizes = [8, 32], strides = [1, 1]} : vector<8x128xf32> to vector<8x32xf32>
    %cst_17 = arith.constant 2.000000e+00 : f32
    %47 = vector.broadcast %cst_17 : f32 to vector<8x32xf32>
    %48 = arith.mulf %47, %46 : vector<8x32xf32>
    %cst_18 = arith.constant 1.000000e+00 : f32
    %49 = vector.broadcast %cst_18 : f32 to vector<8x32xf32>
    %50 = arith.subf %48, %49 : vector<8x32xf32>
    %51 = vector.extract_strided_slice %43 {offsets = [0, 96], sizes = [8, 32], strides = [1, 1]} : vector<8x128xf32> to vector<8x32xf32>
    %52 = arith.mulf %45, %31 : vector<8x32xf32>
    %53 = arith.mulf %44, %50 : vector<8x32xf32>
    %54 = arith.addf %52, %53 : vector<8x32xf32>
    %55 = math.tanh %54 : vector<8x32xf32>
    %56 = arith.mulf %51, %55 : vector<8x32xf32>
    %57 = vector.extract_strided_slice %8 {offsets = [2, 0, 0], sizes = [1, 8, 128], strides = [1, 1, 1]} : vector<4x8x128xf32> to vector<1x8x128xf32>
    %58 = vector.shape_cast %57 : vector<1x8x128xf32> to vector<8x128xf32>
    %59 = arith.truncf %56 : vector<8x32xf32> to vector<8x32xbf16>
    %cst_19 = arith.constant dense<0.000000e+00> : vector<8x128xf32>
    %60 = tpu.matmul %59, %0, %cst_19 {dimension_numbers = #tpu.dot_dimension_numbers<[1], [0], [0], [1], [0, 0, 1, 1], [], []>} : vector<8x32xbf16>, vector<32x128xbf16>, vector<8x128xf32> -> vector<8x128xf32>
    %61 = arith.addf %58, %60 : vector<8x128xf32>
    %62 = arith.negf %61 : vector<8x128xf32>
    %63 = math.exp %62 : vector<8x128xf32>
    %cst_20 = arith.constant 1.000000e+00 : f32
    %64 = vector.broadcast %cst_20 : f32 to vector<8x128xf32>
    %65 = arith.addf %64, %63 : vector<8x128xf32>
    %66 = arith.divf %64, %65 : vector<8x128xf32>
    %67 = vector.extract_strided_slice %66 {offsets = [0, 0], sizes = [8, 32], strides = [1, 1]} : vector<8x128xf32> to vector<8x32xf32>
    %68 = vector.extract_strided_slice %66 {offsets = [0, 32], sizes = [8, 32], strides = [1, 1]} : vector<8x128xf32> to vector<8x32xf32>
    %69 = vector.extract_strided_slice %66 {offsets = [0, 64], sizes = [8, 32], strides = [1, 1]} : vector<8x128xf32> to vector<8x32xf32>
    %cst_21 = arith.constant 2.000000e+00 : f32
    %70 = vector.broadcast %cst_21 : f32 to vector<8x32xf32>
    %71 = arith.mulf %70, %69 : vector<8x32xf32>
    %cst_22 = arith.constant 1.000000e+00 : f32
    %72 = vector.broadcast %cst_22 : f32 to vector<8x32xf32>
    %73 = arith.subf %71, %72 : vector<8x32xf32>
    %74 = vector.extract_strided_slice %66 {offsets = [0, 96], sizes = [8, 32], strides = [1, 1]} : vector<8x128xf32> to vector<8x32xf32>
    %75 = arith.mulf %68, %54 : vector<8x32xf32>
    %76 = arith.mulf %67, %73 : vector<8x32xf32>
    %77 = arith.addf %75, %76 : vector<8x32xf32>
    %78 = math.tanh %77 : vector<8x32xf32>
    %79 = arith.mulf %74, %78 : vector<8x32xf32>
    %80 = vector.extract_strided_slice %8 {offsets = [3, 0, 0], sizes = [1, 8, 128], strides = [1, 1, 1]} : vector<4x8x128xf32> to vector<1x8x128xf32>
    %81 = vector.shape_cast %80 : vector<1x8x128xf32> to vector<8x128xf32>
    %82 = arith.truncf %79 : vector<8x32xf32> to vector<8x32xbf16>
    %cst_23 = arith.constant dense<0.000000e+00> : vector<8x128xf32>
    %83 = tpu.matmul %82, %0, %cst_23 {dimension_numbers = #tpu.dot_dimension_numbers<[1], [0], [0], [1], [0, 0, 1, 1], [], []>} : vector<8x32xbf16>, vector<32x128xbf16>, vector<8x128xf32> -> vector<8x128xf32>
    %84 = arith.addf %81, %83 : vector<8x128xf32>
    %85 = arith.negf %84 : vector<8x128xf32>
    %86 = math.exp %85 : vector<8x128xf32>
    %cst_24 = arith.constant 1.000000e+00 : f32
    %87 = vector.broadcast %cst_24 : f32 to vector<8x128xf32>
    %88 = arith.addf %87, %86 : vector<8x128xf32>
    %89 = arith.divf %87, %88 : vector<8x128xf32>
    %90 = vector.extract_strided_slice %89 {offsets = [0, 0], sizes = [8, 32], strides = [1, 1]} : vector<8x128xf32> to vector<8x32xf32>
    %91 = vector.extract_strided_slice %89 {offsets = [0, 32], sizes = [8, 32], strides = [1, 1]} : vector<8x128xf32> to vector<8x32xf32>
    %92 = vector.extract_strided_slice %89 {offsets = [0, 64], sizes = [8, 32], strides = [1, 1]} : vector<8x128xf32> to vector<8x32xf32>
    %cst_25 = arith.constant 2.000000e+00 : f32
    %93 = vector.broadcast %cst_25 : f32 to vector<8x32xf32>
    %94 = arith.mulf %93, %92 : vector<8x32xf32>
    %cst_26 = arith.constant 1.000000e+00 : f32
    %95 = vector.broadcast %cst_26 : f32 to vector<8x32xf32>
    %96 = arith.subf %94, %95 : vector<8x32xf32>
    %97 = vector.extract_strided_slice %89 {offsets = [0, 96], sizes = [8, 32], strides = [1, 1]} : vector<8x128xf32> to vector<8x32xf32>
    %98 = arith.mulf %91, %77 : vector<8x32xf32>
    %99 = arith.mulf %90, %96 : vector<8x32xf32>
    %100 = arith.addf %98, %99 : vector<8x32xf32>
    %101 = math.tanh %100 : vector<8x32xf32>
    %102 = arith.mulf %97, %101 : vector<8x32xf32>
    %103 = vector.shape_cast %33 : vector<8x32xf32> to vector<1x8x32xf32>
    %104 = vector.shape_cast %56 : vector<8x32xf32> to vector<1x8x32xf32>
    %105 = vector.shape_cast %79 : vector<8x32xf32> to vector<1x8x32xf32>
    %106 = vector.shape_cast %102 : vector<8x32xf32> to vector<1x8x32xf32>
    %107 = tpu.concatenate %103, %104, %105, %106 in 0 : vector<1x8x32xf32>, vector<1x8x32xf32>, vector<1x8x32xf32>, vector<1x8x32xf32> -> vector<4x8x32xf32>
    %cst_27 = arith.constant 0.000000e+00 : f32
    %108 = vector.broadcast %cst_27 : f32 to vector<4x2xf32>
    %109 = vector.extract_strided_slice %107 {offsets = [0, 0, 0], sizes = [4, 1, 32], strides = [1, 1, 1]} : vector<4x8x32xf32> to vector<4x1x32xf32>
    %110 = vector.shape_cast %109 : vector<4x1x32xf32> to vector<4x32xf32>
    %111 = arith.truncf %110 : vector<4x32xf32> to vector<4x32xbf16>
    %c0_28 = arith.constant 0 : index
    %c0_29 = arith.constant 0 : index
    %c0_30 = arith.constant 0 : index
    %112 = vector.load %arg4[%c0_28, %c0_29, %c0_30] : memref<8x2x32xbf16, #tpu.memory_space<vmem>>, vector<1x2x32xbf16>
    %113 = vector.shape_cast %112 : vector<1x2x32xbf16> to vector<2x32xbf16>
    %cst_31 = arith.constant dense<0.000000e+00> : vector<4x2xf32>
    %114 = tpu.matmul %111, %113, %cst_31 {dimension_numbers = #tpu.dot_dimension_numbers<[1], [1], [0], [0], [0, 0, 1, 0], [], []>} : vector<4x32xbf16>, vector<2x32xbf16>, vector<4x2xf32> -> vector<4x2xf32>
    %115 = arith.addf %108, %114 : vector<4x2xf32>
    %116 = vector.extract_strided_slice %107 {offsets = [0, 1, 0], sizes = [4, 1, 32], strides = [1, 1, 1]} : vector<4x8x32xf32> to vector<4x1x32xf32>
    %117 = vector.shape_cast %116 : vector<4x1x32xf32> to vector<4x32xf32>
    %118 = arith.truncf %117 : vector<4x32xf32> to vector<4x32xbf16>
    %c1 = arith.constant 1 : index
    %c0_32 = arith.constant 0 : index
    %c0_33 = arith.constant 0 : index
    %119 = vector.load %arg4[%c1, %c0_32, %c0_33] : memref<8x2x32xbf16, #tpu.memory_space<vmem>>, vector<1x2x32xbf16>
    %120 = vector.shape_cast %119 : vector<1x2x32xbf16> to vector<2x32xbf16>
    %cst_34 = arith.constant dense<0.000000e+00> : vector<4x2xf32>
    %121 = tpu.matmul %118, %120, %cst_34 {dimension_numbers = #tpu.dot_dimension_numbers<[1], [1], [0], [0], [0, 0, 1, 0], [], []>} : vector<4x32xbf16>, vector<2x32xbf16>, vector<4x2xf32> -> vector<4x2xf32>
    %122 = arith.addf %115, %121 : vector<4x2xf32>
    %123 = vector.extract_strided_slice %107 {offsets = [0, 2, 0], sizes = [4, 1, 32], strides = [1, 1, 1]} : vector<4x8x32xf32> to vector<4x1x32xf32>
    %124 = vector.shape_cast %123 : vector<4x1x32xf32> to vector<4x32xf32>
    %125 = arith.truncf %124 : vector<4x32xf32> to vector<4x32xbf16>
    %c2 = arith.constant 2 : index
    %c0_35 = arith.constant 0 : index
    %c0_36 = arith.constant 0 : index
    %126 = vector.load %arg4[%c2, %c0_35, %c0_36] : memref<8x2x32xbf16, #tpu.memory_space<vmem>>, vector<1x2x32xbf16>
    %127 = vector.shape_cast %126 : vector<1x2x32xbf16> to vector<2x32xbf16>
    %cst_37 = arith.constant dense<0.000000e+00> : vector<4x2xf32>
    %128 = tpu.matmul %125, %127, %cst_37 {dimension_numbers = #tpu.dot_dimension_numbers<[1], [1], [0], [0], [0, 0, 1, 0], [], []>} : vector<4x32xbf16>, vector<2x32xbf16>, vector<4x2xf32> -> vector<4x2xf32>
    %129 = arith.addf %122, %128 : vector<4x2xf32>
    %130 = vector.extract_strided_slice %107 {offsets = [0, 3, 0], sizes = [4, 1, 32], strides = [1, 1, 1]} : vector<4x8x32xf32> to vector<4x1x32xf32>
    %131 = vector.shape_cast %130 : vector<4x1x32xf32> to vector<4x32xf32>
    %132 = arith.truncf %131 : vector<4x32xf32> to vector<4x32xbf16>
    %c3 = arith.constant 3 : index
    %c0_38 = arith.constant 0 : index
    %c0_39 = arith.constant 0 : index
    %133 = vector.load %arg4[%c3, %c0_38, %c0_39] : memref<8x2x32xbf16, #tpu.memory_space<vmem>>, vector<1x2x32xbf16>
    %134 = vector.shape_cast %133 : vector<1x2x32xbf16> to vector<2x32xbf16>
    %cst_40 = arith.constant dense<0.000000e+00> : vector<4x2xf32>
    %135 = tpu.matmul %132, %134, %cst_40 {dimension_numbers = #tpu.dot_dimension_numbers<[1], [1], [0], [0], [0, 0, 1, 0], [], []>} : vector<4x32xbf16>, vector<2x32xbf16>, vector<4x2xf32> -> vector<4x2xf32>
    %136 = arith.addf %129, %135 : vector<4x2xf32>
    %137 = vector.extract_strided_slice %107 {offsets = [0, 4, 0], sizes = [4, 1, 32], strides = [1, 1, 1]} : vector<4x8x32xf32> to vector<4x1x32xf32>
    %138 = vector.shape_cast %137 : vector<4x1x32xf32> to vector<4x32xf32>
    %139 = arith.truncf %138 : vector<4x32xf32> to vector<4x32xbf16>
    %c4 = arith.constant 4 : index
    %c0_41 = arith.constant 0 : index
    %c0_42 = arith.constant 0 : index
    %140 = vector.load %arg4[%c4, %c0_41, %c0_42] : memref<8x2x32xbf16, #tpu.memory_space<vmem>>, vector<1x2x32xbf16>
    %141 = vector.shape_cast %140 : vector<1x2x32xbf16> to vector<2x32xbf16>
    %cst_43 = arith.constant dense<0.000000e+00> : vector<4x2xf32>
    %142 = tpu.matmul %139, %141, %cst_43 {dimension_numbers = #tpu.dot_dimension_numbers<[1], [1], [0], [0], [0, 0, 1, 0], [], []>} : vector<4x32xbf16>, vector<2x32xbf16>, vector<4x2xf32> -> vector<4x2xf32>
    %143 = arith.addf %136, %142 : vector<4x2xf32>
    %144 = vector.extract_strided_slice %107 {offsets = [0, 5, 0], sizes = [4, 1, 32], strides = [1, 1, 1]} : vector<4x8x32xf32> to vector<4x1x32xf32>
    %145 = vector.shape_cast %144 : vector<4x1x32xf32> to vector<4x32xf32>
    %146 = arith.truncf %145 : vector<4x32xf32> to vector<4x32xbf16>
    %c5 = arith.constant 5 : index
    %c0_44 = arith.constant 0 : index
    %c0_45 = arith.constant 0 : index
    %147 = vector.load %arg4[%c5, %c0_44, %c0_45] : memref<8x2x32xbf16, #tpu.memory_space<vmem>>, vector<1x2x32xbf16>
    %148 = vector.shape_cast %147 : vector<1x2x32xbf16> to vector<2x32xbf16>
    %cst_46 = arith.constant dense<0.000000e+00> : vector<4x2xf32>
    %149 = tpu.matmul %146, %148, %cst_46 {dimension_numbers = #tpu.dot_dimension_numbers<[1], [1], [0], [0], [0, 0, 1, 0], [], []>} : vector<4x32xbf16>, vector<2x32xbf16>, vector<4x2xf32> -> vector<4x2xf32>
    %150 = arith.addf %143, %149 : vector<4x2xf32>
    %151 = vector.extract_strided_slice %107 {offsets = [0, 6, 0], sizes = [4, 1, 32], strides = [1, 1, 1]} : vector<4x8x32xf32> to vector<4x1x32xf32>
    %152 = vector.shape_cast %151 : vector<4x1x32xf32> to vector<4x32xf32>
    %153 = arith.truncf %152 : vector<4x32xf32> to vector<4x32xbf16>
    %c6 = arith.constant 6 : index
    %c0_47 = arith.constant 0 : index
    %c0_48 = arith.constant 0 : index
    %154 = vector.load %arg4[%c6, %c0_47, %c0_48] : memref<8x2x32xbf16, #tpu.memory_space<vmem>>, vector<1x2x32xbf16>
    %155 = vector.shape_cast %154 : vector<1x2x32xbf16> to vector<2x32xbf16>
    %cst_49 = arith.constant dense<0.000000e+00> : vector<4x2xf32>
    %156 = tpu.matmul %153, %155, %cst_49 {dimension_numbers = #tpu.dot_dimension_numbers<[1], [1], [0], [0], [0, 0, 1, 0], [], []>} : vector<4x32xbf16>, vector<2x32xbf16>, vector<4x2xf32> -> vector<4x2xf32>
    %157 = arith.addf %150, %156 : vector<4x2xf32>
    %158 = vector.extract_strided_slice %107 {offsets = [0, 7, 0], sizes = [4, 1, 32], strides = [1, 1, 1]} : vector<4x8x32xf32> to vector<4x1x32xf32>
    %159 = vector.shape_cast %158 : vector<4x1x32xf32> to vector<4x32xf32>
    %160 = arith.truncf %159 : vector<4x32xf32> to vector<4x32xbf16>
    %c7 = arith.constant 7 : index
    %c0_50 = arith.constant 0 : index
    %c0_51 = arith.constant 0 : index
    %161 = vector.load %arg4[%c7, %c0_50, %c0_51] : memref<8x2x32xbf16, #tpu.memory_space<vmem>>, vector<1x2x32xbf16>
    %162 = vector.shape_cast %161 : vector<1x2x32xbf16> to vector<2x32xbf16>
    %cst_52 = arith.constant dense<0.000000e+00> : vector<4x2xf32>
    %163 = tpu.matmul %160, %162, %cst_52 {dimension_numbers = #tpu.dot_dimension_numbers<[1], [1], [0], [0], [0, 0, 1, 0], [], []>} : vector<4x32xbf16>, vector<2x32xbf16>, vector<4x2xf32> -> vector<4x2xf32>
    %164 = arith.addf %157, %163 : vector<4x2xf32>
    %c0_53 = arith.constant 0 : index
    %c0_54 = arith.constant 0 : index
    %165 = vector.load %arg5[%c0_53, %c0_54] : memref<1x2xf32, #tpu.memory_space<vmem>>, vector<1x2xf32>
    %166 = vector.broadcast %165 : vector<1x2xf32> to vector<4x2xf32>
    %167 = arith.addf %164, %166 : vector<4x2xf32>
    %c0_55 = arith.constant 0 : index
    %c0_56 = arith.constant 0 : index
    %168 = vector.load %arg6[%c0_55, %c0_56] : memref<4x2xf32, #tpu.memory_space<vmem>>, vector<4x2xf32>
    tpu.vector_store %arg6[%c0_55, %c0_56], %167 {strides = array<i32>} : memref<4x2xf32, #tpu.memory_space<vmem>>, vector<4x2xf32>,
    return
  }
}

</mosaic_0001>

<bundles_post_ra>
// kernel: lstm_critic_forward.1
= control target key start
LH: loop header
LB: loop body
LE: loop exit
PB: predicated region body
PF: predicated region fallthrough
CT: control target
= control target key end

     0   :  { %v1035_v0 = vmov 0.0   ;;  %vm1036_vm0 = vmmov 0   ;;  %v1037_v2 = vmov 0   ;;  %vm86_vm1 = vcmask 261120   ;;  %s1268_s3 = inlined_call_operand.vmem [shape: bf16[32,128], index: 3, kind: input, shape index: {}]   ;;  %s1269_s0 = inlined_call_operand.vmem [shape: f32[4,8,1], index: 0, kind: input, shape index: {}]   ;;  %s1270_s1 = inlined_call_operand.vmem [shape: f32[1,1,128], index: 1, kind: input, shape index: {}]   ;;  %s1271_s2 = inlined_call_operand.vmem [shape: f32[1,1,128], index: 2, kind: input, shape index: {}]   ;;  %s1272_s4 = inlined_call_operand.vmem [shape: bf16[8,2,32], index: 4, kind: input, shape index: {}]   ;;  %s1273_s5 = inlined_call_operand.vmem [shape: f32[1,2], index: 5, kind: input, shape index: {}]   ;;  %s1274_s6 = inlined_call_operand.vmem [shape: f32[4,2], index: 6, kind: output, shape index: {}]  }
   0x1   :  { %922 = vmatprep.subr.bf16.mxu0 %v1035_v0  ;;  %v1079_v1 = vld [vmem:[%s1268_s3] sm:$0xff]   ;;  %926 = vmatprep.mubr.msk.bf16.mxu0 %vm1036_vm0, %v1035_v0  ;;  %v1010_v3 = vld [vmem:[%s1268_s3 + $0x8] sm:$0xff]   ;;  %v30_v52 = vld [vmem:[%s1269_s0 + $0x10] sm:$0xff]  ;;  %vm385_vm2 = vcmask 1041409   ;;  %vm388_vm3 = vcmask 1042434   ;;  %vm391_vm4 = vcmask 1043459  }
   0x2   :  { %1007 = vset.pattern.permute.xlu0 %v1037_v2  ;;  %930 = vmatprep.subr.bf16.mxu1 %v1035_v0  ;;  %v28_v4 = vld [vmem:[%s1269_s0] sm:$0xff]  ;;  %v29_v27 = vld [vmem:[%s1269_s0 + $0x8] sm:$0xff]  ;;  %vm857_vm5 = vcmask 11264  }
   0x3   :  { %923 = vmatpush3.bf16.msra.mxu0 %v1079_v1  ;;  %931 = vmatpush3.bf16.msra.mxu1 %v1079_v1  ;;  %v1106_v5 = vld [vmem:[%s1270_s1] ss:$0 sm:$0xff]  ;;  %s1038_s1 = smov 64  }
   0x4   :  { %924 = vmatprep.subr.bf16.mxu0 %v1035_v0  ;;  %35 = vperm.xlu0 %1007, %v28_v4   ;;  %v1112_v8 = vld [vmem:[%s1271_s2] ss:$0 sm:$0xff]  ;;  %s1039_s2 = smov 32  }
   0x5   :  { %932 = vmatprep.subr.bf16.mxu1 %v1035_v0  ;;  %934 = vmatprep.mubr.msk.bf16.mxu1 %vm1036_vm0, %v1035_v0 }
   0x6   :  { %1008 = vset.pattern.permute.xlu1 %v1037_v2 }
   0x7   :  { %925 = vmatpush3.bf16.msra.mxu0 %v1010_v3  ;;  %933 = vmatpush3.bf16.msra.mxu1 %v1010_v3 }
   0x8   :  { %938 = vmatprep.subr.bf16.mxu0 %v1035_v0  ;;  %946 = vmatprep.subr.bf16.mxu1 %v1035_v0 }
   0xa   :  { %927 = vmatmul.mubr.bf16.vlgmr.msra.gmra.mrb[0].mxu0 %v1037_v2 }
   0xb   :  { %939 = vmatpush3.bf16.msra.mxu0 %v1079_v1  ;;  %942 = vmatprep.mubr.msk.bf16.mxu0 %vm1036_vm0, %v1035_v0 }
   0xc   :  { %940 = vmatprep.subr.bf16.mxu0 %v1035_v0 }
   0xf   :  { %941 = vmatpush3.bf16.msra.mxu0 %v1010_v3 }
  0x10   :  { %954 = vmatprep.subr.bf16.mxu0 %v1035_v0 }
  0x83   :  { %v36_v6 = vpop.permute.xlu0 %35 }
  0x84   :  { %v59_v7 = vmul.f32 %v1106_v5, %v36_v6 }
  0x86   :  { %v70_v9 = vadd.f32 %v1112_v8, %v59_v7 }
  0xdd   :  { %v124_v10 = vpop.f32.mrb[0].mxu0 }
  0xde   :  { %v130_v11 = vadd.f32 %v124_v10, %v70_v9  ;;  %v928_v12 = vpop.f32.mrb[1].mxu0 }
  0xdf   :  { %v127_v13 = vpop.f32.mrb[2].mxu0 }
  0xe0   :  { %v867_v14 = vmul.f32 -1.442695, %v130_v11  ;;  %v929_v15 = vpop.f32.mrb[3].mxu0 }
  0xe2   :  { %1011 = vpow2.f32 %v867_v14 }
  0xec   :  { %v1012_v16 = vpop.eup %1011 }
  0xed   :  { %v134_v17 = vadd.f32 1.0, %v1012_v16 }
  0xef   :  { %1013 = vrcp.f32 %v134_v17 }
  0xf9   :  { %v1014_v18 = vpop.eup %1013 }
  0xfa   :  { %v137_v19 = vmul.f32 2.0, %v1014_v18  ;;  %v139_v23 = vmul.f32 0.0, %v1014_v18 }
  0xfc   :  { %v868_v20 = vadd.f32 -1.0, %v137_v19 }
  0xfe   :  { %141 = vrot.lane.b32.xlu0 %v868_v20, %s1038_s1 }
 0x170   :  { %v142_v21 = vpop.permute.xlu0 %141 }
 0x171   :  { %v144_v22 = vmul.f32 %v1014_v18, %v142_v21 }
 0x173   :  { %146 = vrot.lane.b32.xlu1 %v144_v22, %s1039_s2 }
 0x1e5   :  { %v147_v24 = vpop.permute.xlu1 %146 }
 0x1e6   :  { %v149_v25 = vadd.f32 %v147_v24, %v139_v23 }
 0x1e8   :  { %1015 = vtanh.f32 %v149_v25 }
 0x1f2   :  { %v1016_v26 = vpop.eup %1015 }
 0x1f3   :  { %152 = vrot.lane.b32.xlu1 %v1016_v26, %s1038_s1 }
 0x1f7   :  { %40 = vperm.xlu1 %1008, %v29_v27  }
 0x265   :  { %v153_v28 = vpop.permute.xlu1 %152 }
 0x266   :  { %v155_v29 = vmul.f32 %v1014_v18, %v153_v28 }
 0x268   :  { %v156_v30 = vpack.c.bf16 %v155_v29, %v155_v29 }
 0x26a   :  { %158 = vrot.lane.b32.xlu0 %v156_v30, %s1039_s2  ;;  %v380_v54 = vunpack.c.l.b16 %v156_v30 }
 0x26c   :  { %v384_v58 = vrot.slane %v380_v54, 1  ;;  %v557_v59 = vrot.slane %v380_v54, 3  ;;  %v499_v60 = vrot.slane %v380_v54, 2  ;;  %v674_v61 = vrot.slane %v380_v54, 5 }
 0x26d   :  { %v615_v62 = vrot.slane %v380_v54, 4  ;;  %v792_v63 = vrot.slane %v380_v54, 7 }
 0x276   :  { %v41_v32 = vpop.permute.xlu1 %40 }
 0x277   :  { %v60_v33 = vmul.f32 %v1106_v5, %v41_v32 }
 0x279   :  { %v71_v34 = vadd.f32 %v1112_v8, %v60_v33 }
 0x2dc   :  { %v159_v31 = vpop.permute.xlu0 %158 }
 0x2dd   :  { %935 = vmatmul.mubr.msk.bf16.vlgmr.msra.gmra.mrb[0].mxu1 %vm86_vm1, %v159_v31 }
 0x2de   :  { %947 = vmatpush3.bf16.msra.mxu1 %v1079_v1  ;;  %950 = vmatprep.mubr.msk.bf16.mxu1 %vm1036_vm0, %v1035_v0  ;;  %v733_v1 = vrot.slane %v380_v54, 6 }
 0x2df   :  { %948 = vmatprep.subr.bf16.mxu1 %v1035_v0 }
 0x2e2   :  { %949 = vmatpush3.bf16.msra.mxu1 %v1010_v3 }
 0x2e3   :  { %960 = vmatprep.subr.bf16.mxu1 %v1035_v0 }
 0x3b0   :  { %v197_v35 = vpop.f32.mrb[0].mxu1 }
 0x3b1   :  { %v203_v36 = vadd.f32 %v197_v35, %v71_v34  ;;  %v936_v37 = vpop.f32.mrb[1].mxu1 }
 0x3b2   :  { %v200_v38 = vpop.f32.mrb[2].mxu1 }
 0x3b3   :  { %v870_v39 = vmul.f32 -1.442695, %v203_v36  ;;  %v937_v40 = vpop.f32.mrb[3].mxu1 }
 0x3b4   :  { %v31_v40 = vld [vmem:[%s1269_s0 + $0x18] sm:$0xff] }
 0x3b5   :  { %1017 = vpow2.f32 %v870_v39 }
 0x3bf   :  { %v1018_v41 = vpop.eup %1017 }
 0x3c0   :  { %v207_v42 = vadd.f32 1.0, %v1018_v41 }
 0x3c2   :  { %1019 = vrcp.f32 %v207_v42 }
 0x3cc   :  { %v1020_v43 = vpop.eup %1019 }
 0x3cd   :  { %v210_v44 = vmul.f32 2.0, %v1020_v43  ;;  %v212_v48 = vmul.f32 %v1020_v43, %v149_v25 }
 0x3cf   :  { %v871_v45 = vadd.f32 -1.0, %v210_v44 }
 0x3d1   :  { %214 = vrot.lane.b32.xlu0 %v871_v45, %s1038_s1 }
 0x443   :  { %v215_v46 = vpop.permute.xlu0 %214 }
 0x444   :  { %v217_v47 = vmul.f32 %v1020_v43, %v215_v46 }
 0x446   :  { %219 = vrot.lane.b32.xlu1 %v217_v47, %s1039_s2 }
 0x4b8   :  { %v220_v49 = vpop.permute.xlu1 %219 }
 0x4b9   :  { %v222_v50 = vadd.f32 %v220_v49, %v212_v48 }
 0x4bb   :  { %1021 = vtanh.f32 %v222_v50 }
 0x4c5   :  { %v1022_v51 = vpop.eup %1021 }
 0x4c6   :  { %225 = vrot.lane.b32.xlu0 %v1022_v51, %s1038_s1 }
 0x4ca   :  { %45 = vperm.xlu0 %1007, %v30_v52  }
 0x538   :  { %v226_v53 = vpop.permute.xlu0 %225 }
 0x539   :  { %v228_v55 = vmul.f32 %v1020_v43, %v226_v53 }
 0x53b   :  { %v229_v56 = vpack.c.bf16 %v228_v55, %v228_v55 }
 0x53d   :  { %v381_v57 = vunpack.c.l.b16 %v229_v56  ;;  %231 = vrot.lane.b32.xlu1 %v229_v56, %s1039_s2 }
 0x53f   :  { %v442_v2 = vrot.slane %v381_v57, 7  ;;  %v386_v3 = vsel %vm385_vm2, %v381_v57, %v384_v58  ;;  %v558_v4 = vrot.slane %v381_v57, 2  ;;  %v500_v6 = vrot.slane %v381_v57, 1 }
 0x540   :  { %v675_v7 = vrot.slane %v381_v57, 4  ;;  %v616_v9 = vrot.slane %v381_v57, 3  ;;  %v793_v10 = vrot.slane %v381_v57, 6  ;;  %v734_v11 = vrot.slane %v381_v57, 5 }
 0x541   :  { %v443_v12 = vsel %vm385_vm2, %v442_v2, %v380_v54  ;;  %v559_v13 = vsel %vm385_vm2, %v558_v4, %v557_v59  ;;  %v501_v14 = vsel %vm385_vm2, %v500_v6, %v499_v60 }
 0x542   :  { %v676_v15 = vsel %vm385_vm2, %v675_v7, %v674_v61  ;;  %v617_v16 = vsel %vm385_vm2, %v616_v9, %v615_v62  ;;  %v794_v17 = vsel %vm385_vm2, %v793_v10, %v792_v63  ;;  %v735_v18 = vsel %vm385_vm2, %v734_v11, %v733_v1 }
 0x549   :  { %v46_v20 = vpop.permute.xlu0 %45 }
 0x54a   :  { %v61_v21 = vmul.f32 %v1106_v5, %v46_v20 }
 0x54c   :  { %v72_v22 = vadd.f32 %v1112_v8, %v61_v21 }
 0x5af   :  { %v232_v19 = vpop.permute.xlu1 %231 }
 0x5b0   :  { %943 = vmatmul.mubr.msk.bf16.vlgmr.msra.gmra.mrb[4].mxu0 %vm86_vm1, %v232_v19  ;;  %v376_v19 = vld [vmem:[%s1272_s4] sm:$0x1] }
 0x5b1   :  { %956 = vmatprep.mubr.msk.bf16.mxu0 %vm1036_vm0, %v1035_v0  ;;  %v455_v21 = vsel %vm86_vm1, %v376_v19, 0 }
 0x683   :  { %v270_v23 = vpop.f32.mrb[4].mxu0 }
 0x684   :  { %v276_v24 = vadd.f32 %v270_v23, %v72_v22  ;;  %v944_v25 = vpop.f32.mrb[5].mxu0 }
 0x685   :  { %v273_v26 = vpop.f32.mrb[6].mxu0 }
 0x686   :  { %v873_v27 = vmul.f32 -1.442695, %v276_v24  ;;  %v945_v28 = vpop.f32.mrb[7].mxu0 }
 0x688   :  { %1023 = vpow2.f32 %v873_v27 }
 0x692   :  { %v1024_v29 = vpop.eup %1023 }
 0x693   :  { %v280_v30 = vadd.f32 1.0, %v1024_v29 }
 0x695   :  { %1025 = vrcp.f32 %v280_v30 }
 0x69f   :  { %v1026_v31 = vpop.eup %1025 }
 0x6a0   :  { %v283_v32 = vmul.f32 2.0, %v1026_v31  ;;  %v285_v36 = vmul.f32 %v1026_v31, %v222_v50 }
 0x6a2   :  { %v874_v33 = vadd.f32 -1.0, %v283_v32 }
 0x6a4   :  { %287 = vrot.lane.b32.xlu1 %v874_v33, %s1038_s1 }
 0x716   :  { %v288_v34 = vpop.permute.xlu1 %287 }
 0x717   :  { %v290_v35 = vmul.f32 %v1026_v31, %v288_v34 }
 0x719   :  { %292 = vrot.lane.b32.xlu0 %v290_v35, %s1039_s2 }
 0x78b   :  { %v293_v37 = vpop.permute.xlu0 %292 }
 0x78c   :  { %v295_v38 = vadd.f32 %v293_v37, %v285_v36 }
 0x78e   :  { %1027 = vtanh.f32 %v295_v38 }
 0x798   :  { %v1028_v39 = vpop.eup %1027 }
 0x799   :  { %298 = vrot.lane.b32.xlu1 %v1028_v39, %s1038_s1 }
 0x79d   :  { %50 = vperm.xlu1 %1008, %v31_v40  }
 0x80b   :  { %v299_v41 = vpop.permute.xlu1 %298 }
 0x80c   :  { %v301_v42 = vmul.f32 %v1026_v31, %v299_v41 }
 0x80e   :  { %v302_v43 = vpack.c.bf16 %v301_v42, %v301_v42 }
 0x810   :  { %v382_v44 = vunpack.c.l.b16 %v302_v43  ;;  %304 = vrot.lane.b32.xlu0 %v302_v43, %s1039_s2 }
 0x812   :  { %v444_v45 = vrot.slane %v382_v44, 6  ;;  %v387_v46 = vrot.slane %v382_v44, 7  ;;  %v560_v47 = vrot.slane %v382_v44, 1  ;;  %v1158_v48 = vsel %vm388_vm3, %v382_v44, %v501_v14 }
 0x813   :  { %v677_v49 = vrot.slane %v382_v44, 3  ;;  %v618_v50 = vrot.slane %v382_v44, 2  ;;  %v795_v51 = vrot.slane %v382_v44, 5  ;;  %v736_v52 = vrot.slane %v382_v44, 4 }
 0x814   :  { %v445_v53 = vsel %vm388_vm3, %v444_v45, %v443_v12  ;;  %v389_v54 = vsel %vm388_vm3, %v387_v46, %v386_v3  ;;  %v561_v55 = vsel %vm388_vm3, %v560_v47, %v559_v13 }
 0x815   :  { %v1164_v56 = vsel %vm388_vm3, %v677_v49, %v676_v15  ;;  %v1167_v57 = vsel %vm388_vm3, %v618_v50, %v617_v16  ;;  %v1170_v58 = vsel %vm388_vm3, %v795_v51, %v794_v17  ;;  %v1173_v59 = vsel %vm388_vm3, %v736_v52, %v735_v18  ;;  %v878_v18 = vld [vmem:[%s1272_s4 + $0x1] sm:$0x1]  ;;  %v881_v49 = vld [vmem:[%s1272_s4 + $0x2] sm:$0x1]  ;;  %v883_v50 = vld [vmem:[%s1272_s4 + $0x3] sm:$0x1] }
 0x816   :  { %v400_v20 = vsel %vm86_vm1, %v878_v18, 0  ;;  %v512_v51 = vsel %vm86_vm1, %v881_v49, 0  ;;  %v570_v52 = vsel %vm86_vm1, %v883_v50, 0 }
 0x817   :  { %955 = vmatpush3.bf16.xpose.msra.mxu0 %v400_v20 }
 0x818   :  { %966 = vmatprep.subr.bf16.mxu0 %v1035_v0 }
 0x81c   :  { %v51_v61 = vpop.permute.xlu1 %50 }
 0x81d   :  { %v62_v62 = vmul.f32 %v1106_v5, %v51_v61  ;;  %v889_v61 = vld [vmem:[%s1272_s4 + $0x6] sm:$0x1] }
 0x81f   :  { %v73_v63 = vadd.f32 %v1112_v8, %v62_v62  ;;  %v891_v62 = vld [vmem:[%s1272_s4 + $0x7] sm:$0x1] }
 0x882   :  { %v305_v60 = vpop.permute.xlu0 %304 }
 0x883   :  { %951 = vmatmul.mubr.msk.bf16.vlgmr.msra.gmra.mrb[4].mxu1 %vm86_vm1, %v305_v60 }
 0x884   :  { %962 = vmatprep.mubr.msk.bf16.mxu1 %vm1036_vm0, %v1035_v0  ;;  %961 = vmatpush3.bf16.xpose.msra.mxu1 %v455_v21 }
 0x885   :  { %972 = vmatprep.subr.bf16.mxu1 %v1035_v0 }
 0x956   :  { %v343_v1 = vpop.f32.mrb[4].mxu1 }
 0x957   :  { %v349_v2 = vadd.f32 %v343_v1, %v73_v63  ;;  %v952_v3 = vpop.f32.mrb[5].mxu1  ;;  %v747_v63 = vsel %vm86_vm1, %v889_v61, 0  ;;  %v806_v1 = vsel %vm86_vm1, %v891_v62, 0 }
 0x958   :  { %v346_v4 = vpop.f32.mrb[6].mxu1 }
 0x959   :  { %v876_v6 = vmul.f32 -1.442695, %v349_v2  ;;  %v953_v7 = vpop.f32.mrb[7].mxu1 }
 0x95b   :  { %1029 = vpow2.f32 %v876_v6 }
 0x965   :  { %v1030_v9 = vpop.eup %1029 }
 0x966   :  { %v353_v10 = vadd.f32 1.0, %v1030_v9 }
 0x968   :  { %1031 = vrcp.f32 %v353_v10 }
 0x972   :  { %v1032_v11 = vpop.eup %1031 }
 0x973   :  { %v356_v12 = vmul.f32 2.0, %v1032_v11  ;;  %v358_v5 = vmul.f32 %v1032_v11, %v295_v38 }
 0x975   :  { %v877_v13 = vadd.f32 -1.0, %v356_v12 }
 0x977   :  { %360 = vrot.lane.b32.xlu0 %v877_v13, %s1038_s1 }
 0x9e9   :  { %v361_v14 = vpop.permute.xlu0 %360 }
 0x9ea   :  { %v363_v15 = vmul.f32 %v1032_v11, %v361_v14 }
 0x9ec   :  { %365 = vrot.lane.b32.xlu1 %v363_v15, %s1039_s2 }
 0xa5e   :  { %v366_v8 = vpop.permute.xlu1 %365 }
 0xa5f   :  { %v368_v16 = vadd.f32 %v366_v8, %v358_v5 }
 0xa61   :  { %1033 = vtanh.f32 %v368_v16 }
 0xa6b   :  { %v1034_v17 = vpop.eup %1033 }
 0xa6c   :  { %371 = vrot.lane.b32.xlu0 %v1034_v17, %s1038_s1 }
 0xade   :  { %v372_v22 = vpop.permute.xlu0 %371 }
 0xadf   :  { %v374_v23 = vmul.f32 %v1032_v11, %v372_v22 }
 0xae1   :  { %v375_v24 = vpack.c.bf16 %v374_v23, %v374_v23 }
 0xae3   :  { %v383_v25 = vunpack.c.l.b16 %v375_v24 }
 0xae5   :  { %v446_v26 = vrot.slane %v383_v25, 5  ;;  %v390_v27 = vrot.slane %v383_v25, 6  ;;  %v503_v28 = vrot.slane %v383_v25, 7  ;;  %v562_v33 = vsel %vm391_vm4, %v383_v25, %v561_v55  ;;  %v885_v55 = vld [vmem:[%s1272_s4 + $0x4] sm:$0x1] }
 0xae6   :  { %v679_v35 = vrot.slane %v383_v25, 2  ;;  %v620_v36 = vrot.slane %v383_v25, 1  ;;  %v563_v37 = vpack.c.b16 %v562_v33, %v562_v33  ;;  %v797_v41 = vrot.slane %v383_v25, 4 }
 0xae7   :  { %v447_v29 = vsel %vm391_vm4, %v446_v26, %v445_v53  ;;  %v392_v30 = vsel %vm391_vm4, %v390_v27, %v389_v54  ;;  %v504_v34 = vsel %vm391_vm4, %v503_v28, %v1158_v48  ;;  %v738_v42 = vrot.slane %v383_v25, 3 }
 0xae8   :  { %v448_v31 = vpack.c.b16 %v447_v29, %v447_v29  ;;  %v393_v32 = vpack.c.b16 %v392_v30, %v392_v30  ;;  %v505_v38 = vpack.c.b16 %v504_v34, %v504_v34  ;;  %v680_v39 = vsel %vm391_vm4, %v679_v35, %v1164_v56  ;;  %v887_v56 = vld [vmem:[%s1272_s4 + $0x5] sm:$0x1] }
 0xae9   :  { %v621_v40 = vsel %vm391_vm4, %v620_v36, %v1167_v57  ;;  %v681_v43 = vpack.c.b16 %v680_v39, %v680_v39  ;;  %v798_v45 = vsel %vm391_vm4, %v797_v41, %v1170_v58  ;;  %v739_v46 = vsel %vm391_vm4, %v738_v42, %v1173_v59  ;;  %v893_v39 = vld [vmem:[%s1273_s5] ss:$0 sm:$0xff] }
 0xaea   :  { %449 = vrot.lane.b32.xlu0 %v448_v31, %s1039_s2  ;;  %394 = vrot.lane.b32.xlu1 %v393_v32, %s1039_s2  ;;  %v622_v44 = vpack.c.b16 %v621_v40, %v621_v40  ;;  %v799_v47 = vpack.c.b16 %v798_v45, %v798_v45  ;;  %v740_v48 = vpack.c.b16 %v739_v46, %v739_v46  ;;  %v629_v57 = vsel %vm86_vm1, %v885_v55, 0 }
 0xaeb   :  { %v688_v58 = vsel %vm86_vm1, %v887_v56, 0 }
 0xaee   :  { %564 = vrot.lane.b32.xlu0 %v563_v37, %s1039_s2  ;;  %506 = vrot.lane.b32.xlu1 %v505_v38, %s1039_s2 }
 0xaf2   :  { %682 = vrot.lane.b32.xlu0 %v681_v43, %s1039_s2  ;;  %623 = vrot.lane.b32.xlu1 %v622_v44, %s1039_s2 }
 0xaf6   :  { %800 = vrot.lane.b32.xlu0 %v799_v47, %s1039_s2  ;;  %741 = vrot.lane.b32.xlu1 %v740_v48, %s1039_s2 }
 0xb5c   :  { %v450_v53 = vpop.permute.xlu0 %449  ;;  %v395_v54 = vpop.permute.xlu1 %394 }
 0xb5d   :  { %957 = vmatmul.mubr.msk.bf16.vlgmr.msra.gmra.mrb[8].mxu0 %vm86_vm1, %v395_v54  ;;  %963 = vmatmul.mubr.msk.bf16.vlgmr.msra.gmra.mrb[8].mxu1 %vm86_vm1, %v450_v53 }
 0xb5e   :  { %967 = vmatpush3.bf16.xpose.msra.mxu0 %v512_v51  ;;  %973 = vmatpush3.bf16.xpose.msra.mxu1 %v570_v52 }
 0xb5f   :  { %974 = vmatprep.mubr.msk.bf16.mxu1 %vm1036_vm0, %v1035_v0  ;;  %968 = vmatprep.mubr.msk.bf16.mxu0 %vm1036_vm0, %v1035_v0 }
 0xb60   :  { %978 = vmatprep.subr.bf16.mxu0 %v1035_v0  ;;  %984 = vmatprep.subr.bf16.mxu1 %v1035_v0  ;;  %v565_v59 = vpop.permute.xlu0 %564  ;;  %v507_v60 = vpop.permute.xlu1 %506 }
 0xb64   :  { %v683_v2 = vpop.permute.xlu0 %682  ;;  %v624_v3 = vpop.permute.xlu1 %623 }
 0xb65   :  { %969 = vmatmul.mubr.msk.bf16.vlgmr.msra.gmra.mrb[12].mxu0 %vm86_vm1, %v507_v60  ;;  %975 = vmatmul.mubr.msk.bf16.vlgmr.msra.gmra.mrb[12].mxu1 %vm86_vm1, %v565_v59 }
 0xb66   :  { %979 = vmatpush3.bf16.xpose.msra.mxu0 %v629_v57  ;;  %985 = vmatpush3.bf16.xpose.msra.mxu1 %v688_v58 }
 0xb67   :  { %980 = vmatprep.mubr.msk.bf16.mxu0 %vm1036_vm0, %v1035_v0  ;;  %986 = vmatprep.mubr.msk.bf16.mxu1 %vm1036_vm0, %v1035_v0 }
 0xb68   :  { %990 = vmatprep.subr.bf16.mxu0 %v1035_v0  ;;  %996 = vmatprep.subr.bf16.mxu1 %v1035_v0  ;;  %v801_v4 = vpop.permute.xlu0 %800  ;;  %v742_v6 = vpop.permute.xlu1 %741 }
 0xb6d   :  { %981 = vmatmul.mubr.msk.bf16.vlgmr.msra.gmra.mrb[16].mxu0 %vm86_vm1, %v624_v3  ;;  %987 = vmatmul.mubr.msk.bf16.vlgmr.msra.gmra.mrb[16].mxu1 %vm86_vm1, %v683_v2 }
 0xb6e   :  { %991 = vmatpush3.bf16.xpose.msra.mxu0 %v747_v63  ;;  %997 = vmatpush3.bf16.xpose.msra.mxu1 %v806_v1 }
 0xb6f   :  { %992 = vmatprep.mubr.msk.bf16.mxu0 %vm1036_vm0, %v1035_v0  ;;  %998 = vmatprep.mubr.msk.bf16.mxu1 %vm1036_vm0, %v1035_v0 }
 0xb75   :  { %993 = vmatmul.mubr.msk.bf16.vlgmr.msra.gmra.mrb[20].mxu0 %vm86_vm1, %v742_v6  ;;  %999 = vmatmul.mubr.msk.bf16.vlgmr.msra.gmra.mrb[20].mxu1 %vm86_vm1, %v801_v4 }
 0xc30   :  { %v436_v7 = vpop.f32.mrb[8].mxu0  ;;  %v491_v9 = vpop.f32.mrb[8].mxu1 }
 0xc31   :  { %v492_v10 = vadd.f32 %v491_v9, %v436_v7  ;;  %v958_v11 = vpop.f32.mrb[9].mxu0  ;;  %v964_v12 = vpop.f32.mrb[9].mxu1 }
 0xc32   :  { %v439_v13 = vpop.f32.mrb[10].mxu0  ;;  %v494_v14 = vpop.f32.mrb[10].mxu1 }
 0xc33   :  { %v959_v15 = vpop.f32.mrb[11].mxu0  ;;  %v965_v5 = vpop.f32.mrb[11].mxu1 }
 0xc38   :  { %v548_v8 = vpop.f32.mrb[12].mxu0  ;;  %v606_v16 = vpop.f32.mrb[12].mxu1 }
 0xc39   :  { %v554_v17 = vadd.f32 %v548_v8, %v492_v10  ;;  %v970_v18 = vpop.f32.mrb[13].mxu0  ;;  %v976_v0 = vpop.f32.mrb[13].mxu1 }
 0xc3a   :  { %v551_v19 = vpop.f32.mrb[14].mxu0  ;;  %v609_v20 = vpop.f32.mrb[14].mxu1 }
 0xc3b   :  { %v612_v21 = vadd.f32 %v606_v16, %v554_v17  ;;  %v971_v22 = vpop.f32.mrb[15].mxu0  ;;  %v977_v23 = vpop.f32.mrb[15].mxu1 }
 0xc40   :  { %v665_v24 = vpop.f32.mrb[16].mxu0  ;;  %v724_v25 = vpop.f32.mrb[16].mxu1 }
 0xc41   :  { %v671_v26 = vadd.f32 %v665_v24, %v612_v21  ;;  %v982_v27 = vpop.f32.mrb[17].mxu0  ;;  %v988_v28 = vpop.f32.mrb[17].mxu1 }
 0xc42   :  { %v668_v29 = vpop.f32.mrb[18].mxu0  ;;  %v727_v30 = vpop.f32.mrb[18].mxu1 }
 0xc43   :  { %v730_v31 = vadd.f32 %v724_v25, %v671_v26  ;;  %v983_v32 = vpop.f32.mrb[19].mxu0  ;;  %v989_v33 = vpop.f32.mrb[19].mxu1 }
 0xc48   :  { %v783_v34 = vpop.f32.mrb[20].mxu0  ;;  %v842_v35 = vpop.f32.mrb[20].mxu1 }
 0xc49   :  { %v789_v36 = vadd.f32 %v783_v34, %v730_v31  ;;  %v994_v37 = vpop.f32.mrb[21].mxu0  ;;  %v1000_v38 = vpop.f32.mrb[21].mxu1 }
 0xc4a   :  { %v786_v40 = vpop.f32.mrb[22].mxu0  ;;  %v845_v41 = vpop.f32.mrb[22].mxu1 }
 0xc4b   :  { %v848_v42 = vadd.f32 %v842_v35, %v789_v36  ;;  %v995_v43 = vpop.f32.mrb[23].mxu0  ;;  %v1001_v44 = vpop.f32.mrb[23].mxu1 }
 0xc4d   :  { %v856_v45 = vadd.f32 %v893_v39, %v848_v42 }
 0xc4f   :  { %858 = vst.msk [vmem:[%s1274_s6] sm:$0xf] %vm857_vm5, %v856_v45 }

</bundles_post_ra>
